<compile_context>
chip_gen: v5e
topology: v5e:2x2
jax: 0.10.0
libtpu: 0.0.40
codegen_flags: <defaults>
</compile_context>

<pallas_src>
import functools
import math

import jax
import jax.numpy as jnp
from jax.experimental import pallas as pl
from jax.experimental.pallas import tpu as pltpu


def _sublane_multiple(dtype) -> int:
    itemsize = jnp.dtype(dtype).itemsize
    return {4: 8, 2: 16, 1: 32}.get(itemsize, 8)


def _mcc_stats_kernel(y_pred_ref, y_true_ref, out_ref, *, logits):
    """Streaming lane-dense reduction over the batch axis.

    out_ref is (3, 8, RC) f32 and stays resident in VMEM across the grid:
      out[0] += sum(yt * t),  out[1] += sum(t),  out[2] += sum(yt)
    with t = tanh(x/2) when `logits` (sigmoid = 0.5*(t+1) folded into the
    epilogue) or t = y_pred otherwise.
    """
    j = pl.program_id(0)

    @pl.when(j == 0)
    def _():
        out_ref[...] = jnp.zeros_like(out_ref)

    yp = y_pred_ref[...].astype(jnp.float32)
    yt = y_true_ref[...].astype(jnp.float32)
    if logits:
        # One VALU mul + one EUP push per element (cheaper than exp + recip).
        t = jnp.tanh(0.5 * yp)
    else:
        t = yp

    rows, lanes = t.shape          # static (tile_rows, RC), tile_rows % 8 == 0
    g = rows // 8
    if g == 1:
        out_ref[0, :, :] += yt * t
        out_ref[1, :, :] += t
        out_ref[2, :, :] += yt
    else:
        # Fold 8-row groups with VALU adds only; the 8->1 sublane (XLU)
        # reduction happens once in the wrapper epilogue.
        out_ref[0, :, :] += (yt * t).reshape(g, 8, lanes).sum(axis=0)
        out_ref[1, :, :] += t.reshape(g, 8, lanes).sum(axis=0)
        out_ref[2, :, :] += yt.reshape(g, 8, lanes).sum(axis=0)


def _tail_stats(y_pred_tail, y_true_tail, logits):
    """Exact per-class sums for the small ragged tail (plain jnp, fused by XLA)."""
    yp = y_pred_tail.astype(jnp.float32)
    yt = y_true_tail.astype(jnp.float32)
    sig = jax.nn.sigmoid(yp) if logits else yp
    tp = jnp.sum(yt * sig, axis=0)
    s_yp = jnp.sum(sig, axis=0)
    s_yt = jnp.sum(yt, axis=0)
    return tp, s_yp, s_yt


def mcc_loss(y_pred, y_true, *, epsilon=1e-7, logits=True,
             block_target_bytes=4 << 20):
    assert y_pred.ndim == 2 and y_true.ndim == 2
    N, C = y_pred.shape
    assert y_true.shape == (N, C)

    # ---- static tiling parameters (all Python ints) -----------------------
    R = 128 // math.gcd(C, 128)          # rows folded into the lane axis
    RC = R * C                           # lane-dense minor dim, multiple of 128

    yp_item = jnp.dtype(y_pred.dtype).itemsize
    yt_item = jnp.dtype(y_true.dtype).itemsize
    sub = max(_sublane_multiple(y_pred.dtype), _sublane_multiple(y_true.dtype))

    block_target_bytes = min(int(block_target_bytes), 8 << 20)   # VMEM safety cap
    bytes_per_row = RC * max(yp_item, yt_item)
    rows_budget = max(sub, block_target_bytes // max(bytes_per_row, 1))
    tile_rows = max(sub, (rows_budget // sub) * sub)

    n_bulk = (N // R) * R                # original rows usable via free reshape
    m_total = n_bulk // R                # rows of the lane-folded (M, RC) view
    tile_rows = min(tile_rows, (m_total // sub) * sub)
    num_full = (m_total // tile_rows) if tile_rows > 0 else 0

    tp_b = jnp.zeros((C,), jnp.float32)
    s_yp_b = jnp.zeros((C,), jnp.float32)
    s_yt_b = jnp.zeros((C,), jnp.float32)

    if num_full > 0:
        n_kernel = num_full * tile_rows * R     # original rows covered by kernel

        # Row-major reshape (n_bulk, C) -> (M, RC): zero-copy bitcast when
        # R | N; the ragged prefix slice is the only path that may copy.
        if n_bulk == N:
            yp_bulk = y_pred.reshape(m_total, RC)
            yt_bulk = y_true.reshape(m_total, RC)
        else:
            yp_bulk = y_pred[:n_bulk].reshape(m_total, RC)
            yt_bulk = y_true[:n_bulk].reshape(m_total, RC)

        tile_bytes = tile_rows * RC * (yp_item + yt_item)
        # 2 double-buffered input tiles + tiny resident output + margin;
        # always within v7x's 64 MiB VMEM given the 8 MiB block cap.
        vmem_limit = int(min(56 << 20, max(32 << 20, 2 * tile_bytes + (8 << 20))))

        kernel = functools.partial(_mcc_stats_kernel, logits=logits)
        partials = pl.pallas_call(
            kernel,
            out_shape=jax.ShapeDtypeStruct((3, 8, RC), jnp.float32),
            grid=(num_full,),
            in_specs=[
                pl.BlockSpec((tile_rows, RC), lambda j: (j, 0)),
                pl.BlockSpec((tile_rows, RC), lambda j: (j, 0)),
            ],
            out_specs=pl.BlockSpec((3, 8, RC), lambda j: (0, 0, 0)),
            compiler_params=pltpu.CompilerParams(
                dimension_semantics=("arbitrary",),
                vmem_limit_bytes=vmem_limit,
            ),
        )(yp_bulk, yt_bulk)

        # Tiny epilogue: fold sublanes and the R lane segments -> per-class sums.
        stats = partials.sum(axis=1).reshape(3, R, C).sum(axis=1)   # (3, C)
        acc_a, acc_t, acc_y = stats[0], stats[1], stats[2]
        if logits:
            tp_b = 0.5 * (acc_a + acc_y)                       # sum(yt * sigmoid)
            s_yp_b = 0.5 * (acc_t + jnp.float32(n_kernel))     # sum(sigmoid)
        else:
            tp_b = acc_a
            s_yp_b = acc_t
        s_yt_b = acc_y
    else:
        n_kernel = 0

    # Ragged tail (< one tile of rows + the N % R rows): plain jnp reduction.
    if n_kernel < N:
        tp_t, s_yp_t, s_yt_t = _tail_stats(y_pred[n_kernel:], y_true[n_kernel:],
                                           logits)
        tp = tp_b + tp_t
        s_yp = s_yp_b + s_yp_t
        s_yt = s_yt_b + s_yt_t
    else:
        tp, s_yp, s_yt = tp_b, s_yp_b, s_yt_b

    fp = s_yp - tp
    fn = s_yt - tp
    tn = jnp.float32(N) - s_yp - s_yt + tp
    mcc = (tp * tn - fp * fn) / (
        jnp.sqrt((tp + fp) * (tp + fn) * (tn + fp) * (tn + fn)) + epsilon)
    return 1.0 - jnp.mean(mcc)


def _mcc_loss_ref(y_pred, y_true, epsilon=1e-7, logits=True):
    yp = y_pred.astype(jnp.float32)
    if logits:
        yp = jax.nn.sigmoid(yp)
    yt = y_true.astype(jnp.float32)
    tp = jnp.sum(yt * yp, axis=0)
    tn = jnp.sum((1 - yt) * (1 - yp), axis=0)
    fp = jnp.sum((1 - yt) * yp, axis=0)
    fn = jnp.sum(yt * (1 - yp), axis=0)
    mcc = (tp * tn - fp * fn) / (
        jnp.sqrt((tp + fp) * (tp + fn) * (tn + fp) * (tn + fn)) + epsilon)
    return 1.0 - jnp.mean(mcc)


if __name__ == "__main__":
    key = jax.random.PRNGKey(0)
    k1, k2 = jax.random.split(key)

    # Case 1: canonical small (batch, classes) input — single full tile.
    N, C = 64, 16
    y_pred = jax.random.normal(k1, (N, C), dtype=jnp.float32)            # logits
    y_true = jax.random.bernoulli(k2, 0.5, (N, C)).astype(jnp.float32)   # {0,1}
    loss = jax.block_until_ready(jax.jit(mcc_loss)(y_pred, y_true))
    ref = _mcc_loss_ref(y_pred, y_true)
    assert jnp.allclose(loss, ref, atol=1e-5, rtol=1e-5), (loss, ref)

    # Case 2: ragged batch -> multi-block accumulation + jnp tail
    # (small block budget forces several grid steps).
    N2, C2 = 4100, 16
    yp2 = jax.random.normal(k1, (N2, C2), dtype=jnp.float32)
    yt2 = jax.random.bernoulli(k2, 0.3, (N2, C2)).astype(jnp.float32)
    f2 = jax.jit(functools.partial(mcc_loss, block_target_bytes=64 * 1024))
    loss2 = jax.block_until_ready(f2(yp2, yt2))
    ref2 = _mcc_loss_ref(yp2, yt2)
    assert jnp.allclose(loss2, ref2, atol=1e-4, rtol=1e-4), (loss2, ref2)

    # Case 3: caller-provided bf16 inputs (no in-wrapper cast; kernel upcasts,
    # tile rows rounded to the bf16 sublane multiple of 16).
    N3, C3 = 256, 16
    yp3 = jax.random.normal(k1, (N3, C3), dtype=jnp.float32).astype(jnp.bfloat16)
    yt3 = jax.random.bernoulli(k2, 0.4, (N3, C3)).astype(jnp.bfloat16)
    loss3 = jax.block_until_ready(jax.jit(mcc_loss)(yp3, yt3))
    ref3 = _mcc_loss_ref(yp3.astype(jnp.float32), yt3.astype(jnp.float32))
    assert jnp.allclose(loss3, ref3, atol=1e-4, rtol=1e-4), (loss3, ref3)

    print("KERNEL_OK")
</pallas_src>

<mosaic_0001>
module attributes {stable_mosaic.version = 11 : i64} {
  func.func @_mcc_stats_kernel(%arg0: i32, %arg1: memref<8x128xf32, #tpu.memory_space<vmem>>, %arg2: memref<8x128xf32, #tpu.memory_space<vmem>>, %arg3: memref<3x8x128xf32, #tpu.memory_space<vmem>>) attributes {dimension_semantics = [#tpu.dimension_semantics<arbitrary>], iteration_bounds = array<i64: 1>, scalar_prefetch = 0 : i64, scratch_operands = 0 : i64, tpu.core_type = #tpu.core_type<tc>, window_params = [{transform_indices = @transform_0, window_bounds = array<i64: 8, 128>}, {transform_indices = @transform_1, window_bounds = array<i64: 8, 128>}, {pipeline_mode = #tpu.pipeline_mode<synchronous>, transform_indices = @transform_2, window_bounds = array<i64: 3, 8, 128>}]} {
    %c0_i32 = arith.constant 0 : i32
    %0 = arith.cmpi eq, %arg0, %c0_i32 : i32
    %1 = arith.extui %0 : i1 to i32
    %c0_i32_0 = arith.constant 0 : i32
    %2 = arith.cmpi ne, %1, %c0_i32_0 : i32
    scf.if %2 {
      %cst_20 = arith.constant 0.000000e+00 : f32
      %27 = vector.broadcast %cst_20 : f32 to vector<3x8x128xf32>
      %c0_21 = arith.constant 0 : index
      %c0_22 = arith.constant 0 : index
      %c0_23 = arith.constant 0 : index
      %28 = vector.load %arg3[%c0_21, %c0_22, %c0_23] : memref<3x8x128xf32, #tpu.memory_space<vmem>>, vector<3x8x128xf32>
      tpu.vector_store %arg3[%c0_21, %c0_22, %c0_23], %27 {strides = array<i32>} : memref<3x8x128xf32, #tpu.memory_space<vmem>>, vector<3x8x128xf32>,
    } else {
    }
    %c0 = arith.constant 0 : index
    %c0_1 = arith.constant 0 : index
    %3 = vector.load %arg1[%c0, %c0_1] : memref<8x128xf32, #tpu.memory_space<vmem>>, vector<8x128xf32>
    %c0_2 = arith.constant 0 : index
    %c0_3 = arith.constant 0 : index
    %4 = vector.load %arg2[%c0_2, %c0_3] : memref<8x128xf32, #tpu.memory_space<vmem>>, vector<8x128xf32>
    %cst = arith.constant 5.000000e-01 : f32
    %5 = vector.broadcast %cst : f32 to vector<8x128xf32>
    %6 = arith.mulf %5, %3 : vector<8x128xf32>
    %7 = math.tanh %6 : vector<8x128xf32>
    %c0_4 = arith.constant 0 : index
    %c0_5 = arith.constant 0 : index
    %c0_6 = arith.constant 0 : index
    %8 = vector.load %arg3[%c0_4, %c0_5, %c0_6] : memref<3x8x128xf32, #tpu.memory_space<vmem>>, vector<1x8x128xf32>
    %9 = vector.shape_cast %8 : vector<1x8x128xf32> to vector<8x128xf32>
    %10 = arith.mulf %4, %7 : vector<8x128xf32>
    %11 = arith.addf %9, %10 : vector<8x128xf32>
    %c0_7 = arith.constant 0 : index
    %c0_8 = arith.constant 0 : index
    %c0_9 = arith.constant 0 : index
    %12 = vector.load %arg3[%c0_7, %c0_8, %c0_9] : memref<3x8x128xf32, #tpu.memory_space<vmem>>, vector<1x8x128xf32>
    %13 = vector.shape_cast %12 : vector<1x8x128xf32> to vector<8x128xf32>
    %14 = vector.shape_cast %11 : vector<8x128xf32> to vector<1x8x128xf32>
    tpu.vector_store %arg3[%c0_7, %c0_8, %c0_9], %14 {strides = array<i32>} : memref<3x8x128xf32, #tpu.memory_space<vmem>>, vector<1x8x128xf32>,
    %c1 = arith.constant 1 : index
    %c0_10 = arith.constant 0 : index
    %c0_11 = arith.constant 0 : index
    %15 = vector.load %arg3[%c1, %c0_10, %c0_11] : memref<3x8x128xf32, #tpu.memory_space<vmem>>, vector<1x8x128xf32>
    %16 = vector.shape_cast %15 : vector<1x8x128xf32> to vector<8x128xf32>
    %17 = arith.addf %16, %7 : vector<8x128xf32>
    %c1_12 = arith.constant 1 : index
    %c0_13 = arith.constant 0 : index
    %c0_14 = arith.constant 0 : index
    %18 = vector.load %arg3[%c1_12, %c0_13, %c0_14] : memref<3x8x128xf32, #tpu.memory_space<vmem>>, vector<1x8x128xf32>
    %19 = vector.shape_cast %18 : vector<1x8x128xf32> to vector<8x128xf32>
    %20 = vector.shape_cast %17 : vector<8x128xf32> to vector<1x8x128xf32>
    tpu.vector_store %arg3[%c1_12, %c0_13, %c0_14], %20 {strides = array<i32>} : memref<3x8x128xf32, #tpu.memory_space<vmem>>, vector<1x8x128xf32>,
    %c2 = arith.constant 2 : index
    %c0_15 = arith.constant 0 : index
    %c0_16 = arith.constant 0 : index
    %21 = vector.load %arg3[%c2, %c0_15, %c0_16] : memref<3x8x128xf32, #tpu.memory_space<vmem>>, vector<1x8x128xf32>
    %22 = vector.shape_cast %21 : vector<1x8x128xf32> to vector<8x128xf32>
    %23 = arith.addf %22, %4 : vector<8x128xf32>
    %c2_17 = arith.constant 2 : index
    %c0_18 = arith.constant 0 : index
    %c0_19 = arith.constant 0 : index
    %24 = vector.load %arg3[%c2_17, %c0_18, %c0_19] : memref<3x8x128xf32, #tpu.memory_space<vmem>>, vector<1x8x128xf32>
    %25 = vector.shape_cast %24 : vector<1x8x128xf32> to vector<8x128xf32>
    %26 = vector.shape_cast %23 : vector<8x128xf32> to vector<1x8x128xf32>
    tpu.vector_store %arg3[%c2_17, %c0_18, %c0_19], %26 {strides = array<i32>} : memref<3x8x128xf32, #tpu.memory_space<vmem>>, vector<1x8x128xf32>,
    return
  }
  func.func @transform_0(%arg0: i32) -> (i32, i32) {
    %c0_i32 = arith.constant 0 : i32
    %c0_i32_0 = arith.constant 0 : i32
    return %arg0, %c0_i32 : i32, i32
  }
  func.func @transform_1(%arg0: i32) -> (i32, i32) {
    %c0_i32 = arith.constant 0 : i32
    %c0_i32_0 = arith.constant 0 : i32
    return %arg0, %c0_i32 : i32, i32
  }
  func.func @transform_2(%arg0: i32) -> (i32, i32, i32) {
    %c0_i32 = arith.constant 0 : i32
    %c0_i32_0 = arith.constant 0 : i32
    %c0_i32_1 = arith.constant 0 : i32
    %c0_i32_2 = arith.constant 0 : i32
    return %c0_i32, %c0_i32_0, %c0_i32_1 : i32, i32, i32
  }
}

</mosaic_0001>

<bundles_post_ra>
// kernel: mcc_loss.1
= control target key start
LH: loop header
LB: loop body
LE: loop exit
PB: predicated region body
PF: predicated region fallthrough
CT: control target
= control target key end

     0   :  { %s75_s0 = inlined_call_operand.vmem [shape: f32[8,128], index: 0, kind: input, shape index: {}]   ;;  %s76_s1 = inlined_call_operand.vmem [shape: f32[8,128], index: 1, kind: input, shape index: {}]   ;;  %s77_s2 = inlined_call_operand.vmem [shape: f32[3,8,128], index: 2, kind: output, shape index: {}]  }
   0x1   :  { %v18_v0 = vld [vmem:[%s75_s0] sm:$0xff] }
   0x2   :  { %v19_v1 = vld [vmem:[%s76_s1] sm:$0xff]  ;;  %v20_v2 = vmul.f32 0.5, %v18_v0 }
   0x3   :  { %41 = vst [vmem:[%s77_s2 + $0x10] sm:$0xff] %v19_v1 }
   0x4   :  { %43 = vtanh.f32 %v20_v2 }
   0xa   :  { %v44_v3 = vpop.eup %43 }
   0xb   :  { %v23_v4 = vmul.f32 %v44_v3, %v19_v1  ;;  %39 = vst [vmem:[%s77_s2 + $0x8] sm:$0xff] %v44_v3 }
   0xd   :  { %25 = vst [vmem:[%s77_s2] sm:$0xff] %v23_v4 }

</bundles_post_ra>
